<compile_context>
chip_gen: v7x
topology: tpu7x:2x2x1
jax: 0.10.0
libtpu: 0.0.40
codegen_flags: <defaults>
</compile_context>

<pallas_src>
import jax
import jax.numpy as jnp
from jax.experimental import pallas as pl
from jax.experimental.pallas import tpu as pltpu

_PAD_LANE = 1024                        # fallback slab width (total not 128-aligned)
_LANE_CANDIDATES = (1024, 512, 256, 128)  # widest lane-multiple dividing total
_MIN_SPLIT_ROWS = 16                    # split into >=2 grid steps above this (v7x: 2 TCs)


def _double_kernel(x_ref, o_ref):
    # CustomFunc1.forward: foo + foo.  One load, one VPU add, one store.
    v = x_ref[...]
    o_ref[...] = v + v


def _tpu_vmem_capacity_bytes():
    """Best-effort VMEM capacity query; conservative (v7x-class) fallback."""
    try:
        info = pltpu.get_tpu_info()
        cap = getattr(info, "vmem_capacity_bytes", None)
        if cap:
            return int(cap)
    except Exception:
        pass
    return 64 * 1024 * 1024


def _tiling_params():
    """(target_block_bytes, vmem_limit_bytes) per TPU generation."""
    cap = _tpu_vmem_capacity_bytes()
    if cap >= 100 * 1024 * 1024:
        # v5e / v6e: 128 MiB VMEM -> 8 MiB blocks (32 MiB live double-buffered).
        return 8 * 1024 * 1024, 64 * 1024 * 1024
    # v7x-class: 64 MiB VMEM per TC -> 4 MiB blocks, limit <= ~40 MiB.
    return 4 * 1024 * 1024, 40 * 1024 * 1024


def _choose_block_rows(rows, lane, itemsize, target_block_bytes):
    """Pick a row-block size (multiple of 8, or the full row count)."""
    br = (target_block_bytes // (lane * itemsize)) // 8 * 8
    br = max(br, 8)
    if rows > br:
        return br
    if rows >= _MIN_SPLIT_ROWS:
        # Ensure >= 2 grid steps so both v7x TensorCores get work.
        half = -(-rows // 2)
        half = -(-half // 8) * 8
        if half < rows:
            return half
    # Single full-array block (exempt from the (8,128) divisibility rule).
    return rows


def _double_2d(x2d, block_rows, vmem_limit_bytes, total_elems):
    rows, cols = x2d.shape
    grid = (pl.cdiv(rows, block_rows),)   # Pallas masks the final partial block
    itemsize = jnp.dtype(x2d.dtype).itemsize
    return pl.pallas_call(
        _double_kernel,
        out_shape=jax.ShapeDtypeStruct((rows, cols), x2d.dtype),
        grid_spec=pltpu.PrefetchScalarGridSpec(
            num_scalar_prefetch=0,
            grid=grid,
            in_specs=[pl.BlockSpec((block_rows, cols), lambda i: (i, 0))],
            out_specs=pl.BlockSpec((block_rows, cols), lambda i: (i, 0)),
        ),
        compiler_params=pltpu.CompilerParams(
            dimension_semantics=("parallel",),
            vmem_limit_bytes=vmem_limit_bytes,
        ),
        cost_estimate=pl.CostEstimate(
            flops=total_elems,
            transcendentals=0,
            bytes_accessed=2 * total_elems * itemsize,
        ),
    )(x2d)


def module_with_grad_func_forward(x):
    """Forward of ModuleWithGradFunc(CustomFunc1): y = x + x (elementwise)."""
    orig_shape = x.shape
    total = x.size
    itemsize = jnp.dtype(x.dtype).itemsize
    target_block_bytes, vmem_limit = _tiling_params()

    # Fast path: zero-copy reshape to a lane-dense slab when total is a
    # multiple of 128 -- no pad, no slice-back.
    lane = None
    for cand in _LANE_CANDIDATES:
        if total % cand == 0:
            lane = cand
            break

    if lane is not None:
        rows = total // lane
        x2d = x.reshape(rows, lane)
        br = _choose_block_rows(rows, lane, itemsize, target_block_bytes)
        y2d = _double_2d(x2d, br, vmem_limit, total)
        return y2d.reshape(orig_shape)

    # Fallback: pad only to the next lane multiple (< 1024 extra elements);
    # the final partial row-block is handled by the grid masking, not by
    # rounding rows up to a block multiple.
    lane = _PAD_LANE
    rows = pl.cdiv(total, lane)
    flat = x.reshape(-1)
    padded_total = rows * lane
    if padded_total != total:
        flat = jnp.pad(flat, (0, padded_total - total))
    x2d = flat.reshape(rows, lane)
    br = _choose_block_rows(rows, lane, itemsize, target_block_bytes)
    y2d = _double_2d(x2d, br, vmem_limit, total)
    return y2d.reshape(-1)[:total].reshape(orig_shape)


if __name__ == "__main__":
    key = jax.random.PRNGKey(0)
    # Small NCHW input consistent with the module's elementwise forward.
    x = jax.random.normal(key, (2, 4, 16, 16), dtype=jnp.float32)

    y = module_with_grad_func_forward(x)
    jax.block_until_ready(y)

    # Verify against the reference semantics (x + x).
    ref = x + x
    assert y.shape == x.shape and y.dtype == x.dtype
    assert jnp.allclose(y, ref), "mismatch vs reference x + x"

    print("KERNEL_OK")
</pallas_src>

<mosaic_0001>
module attributes {stable_mosaic.version = 11 : i64} {
  func.func @_double_kernel(%arg0: i32, %arg1: memref<2x1024xf32, #tpu.memory_space<vmem>>, %arg2: memref<2x1024xf32, #tpu.memory_space<vmem>>) attributes {dimension_semantics = [#tpu.dimension_semantics<parallel>], iteration_bounds = array<i64: 1>, scalar_prefetch = 0 : i64, scratch_operands = 0 : i64, tpu.core_type = #tpu.core_type<tc>, window_params = [{transform_indices = @transform_0, window_bounds = array<i64: 2, 1024>}, {transform_indices = @transform_1, window_bounds = array<i64: 2, 1024>}]} {
    %c0 = arith.constant 0 : index
    %c0_0 = arith.constant 0 : index
    %0 = vector.load %arg1[%c0, %c0_0] : memref<2x1024xf32, #tpu.memory_space<vmem>>, vector<2x1024xf32>
    %1 = arith.addf %0, %0 : vector<2x1024xf32>
    %c0_1 = arith.constant 0 : index
    %c0_2 = arith.constant 0 : index
    %2 = vector.load %arg2[%c0_1, %c0_2] : memref<2x1024xf32, #tpu.memory_space<vmem>>, vector<2x1024xf32>
    tpu.vector_store %arg2[%c0_1, %c0_2], %1 {strides = array<i32>} : memref<2x1024xf32, #tpu.memory_space<vmem>>, vector<2x1024xf32>,
    return
  }
  func.func @transform_0(%arg0: i32) -> (i32, i32) {
    %c0_i32 = arith.constant 0 : i32
    %c0_i32_0 = arith.constant 0 : i32
    return %arg0, %c0_i32 : i32, i32
  }
  func.func @transform_1(%arg0: i32) -> (i32, i32) {
    %c0_i32 = arith.constant 0 : i32
    %c0_i32_0 = arith.constant 0 : i32
    return %arg0, %c0_i32 : i32, i32
  }
}

</mosaic_0001>

<bundles_post_ra>
// kernel: tpu_custom_call.1
= control target key start
LH: loop header
LB: loop body
LE: loop exit
PB: predicated region body
PF: predicated region fallthrough
CT: control target
= control target key end

     0   :  { %6 = vsyncpa [#allocation3], 0  ;;  %s128_s0 = inlined_call_operand.hbm [shape: f32[2,1024], index: 0, kind: input, shape index: {}]   ;;  %s129_s1 = inlined_call_operand.hbm [shape: f32[2,1024], index: 1, kind: output, shape index: {}]  }
   0x1   :  { %7 = vsyncpa [#allocation4], 0  ;;  %s92_s6 = smov [#allocation2]   ;;  %s44_s10 = scalar_lea.hbm %s128_s0, 256 }
   0x2   :  { %s14_s7 = sshll.u32 %s92_s6, 4  ;;  %p45_p0 = scmp.ne.s32.totalorder %s128_s0, %s44_s10  ;;  %s15_s7 = int_to_ptr.vmem [resolvable:$true] %s14_s7 }
   0x3   :  { %p48_p1 = scmp.lt.u32.totalorder %s44_s10, %s128_s0 }
   0x5   :  { %p50_p2 = pnand %p48_p1, %p45_p0 }
   0x7   :  { %53 = shalt.err (!%p50_p2)
}
   0x8   :  { %s54_s15 = scalar_lea.vmem %s15_s7, 256  ;;  %p59_p4 = scmp.lt.s32.totalorder %s15_s7, %s15_s7 }
   0x9   :  { %p55_p3 = scmp.ne.s32.totalorder %s15_s7, %s54_s15  ;;  %p60_p5 = scmp.lt.s32.totalorder %s54_s15, %s54_s15 }
   0xb   :  { %p61_p6 = por %p60_p5, %p59_p4 }
   0xd   :  { %p62_p7 = pnand %p61_p6, %p55_p3 }
   0xf   :  { %65 = shalt.err (!%p62_p7)
}
  0x10   :  { %17 = dma.hbm_to_vmem [thread:$0]  %s128_s0, 256, %s15_s7, [#allocation3]  }
  0x11   :  { %88 = dma.done.wait [#allocation3], 256  }
  0x12   :  { %89 = vsyncadd [#allocation3], 4294967040  ;;  %s93_s18 = smov [#allocation5]   ;;  %v21_v0 = vld [vmem:[#allocation2] sm:$0xff]  ;;  %v22_v1 = vld [vmem:[#allocation2 + $0x8] sm:$0xff] }
  0x13   :  { %s33_s19 = sshll.u32 %s93_s18, 4  ;;  %v23_v2 = vadd.f32 %v21_v0, %v21_v0  ;;  %v24_v3 = vadd.f32 %v22_v1, %v22_v1  ;;  %s34_s19 = int_to_ptr.vmem [resolvable:$true] %s33_s19 }
  0x14   :  { %s66_s20 = scalar_lea.vmem %s34_s19, 256  ;;  %p71_p9 = scmp.lt.s32.totalorder %s34_s19, %s34_s19 }
  0x15   :  { %25 = vst [vmem:[#allocation5] sm:$0xff] %v23_v2  ;;  %26 = vst [vmem:[#allocation5 + $0x8] sm:$0xff] %v24_v3  ;;  %p67_p8 = scmp.ne.s32.totalorder %s34_s19, %s66_s20  ;;  %p72_p10 = scmp.lt.s32.totalorder %s66_s20, %s66_s20 }
  0x17   :  { %p73_p11 = por %p72_p10, %p71_p9 }
  0x19   :  { %p74_p12 = pnand %p73_p11, %p67_p8 }
  0x1b   :  { %77 = shalt.err (!%p74_p12)
}
  0x1c   :  { %s78_s22 = scalar_lea.hbm %s129_s1, 256 }
  0x1d   :  { %p79_p13 = scmp.ne.s32.totalorder %s129_s1, %s78_s22  ;;  %p82_p0 = scmp.lt.u32.totalorder %s78_s22, %s129_s1 }
  0x1f   :  { %p84_p1 = pnand %p82_p0, %p79_p13 }
  0x21   :  { %87 = shalt.err (!%p84_p1)
}
  0x22   :  { %36 = dma.vmem_to_hbm [thread:$0]  %s34_s19, 256, %s129_s1, [#allocation4]  }
  0x23   :  { %90 = dma.done.wait [#allocation4], 256  }
  0x24   :  { %91 = vsyncadd [#allocation4], 4294967040 }
  0x25   :  { %40 = vsyncpa [#allocation3], 1 }
  0x26   :  { %41 = vsyncpa [#allocation4], 1 }

</bundles_post_ra>
